<compile_context>
chip_gen: v5e
topology: v5e:2x2
jax: 0.10.0
libtpu: 0.0.40
codegen_flags: <defaults>
</compile_context>

<pallas_src>
import math
import functools

import jax
import jax.numpy as jnp
from jax.experimental import pallas as pl
from jax.experimental.pallas import tpu as pltpu

LANE = 128
SUBLANE = 8


def _round_up(x, m):
    return ((x + m - 1) // m) * m


def _decoder_kernel(z_ref, w1_ref, b1_ref, w2_ref, b2_ref, o_ref):
    """One batch tile of relu(z @ W1 + b1) @ w2 + b2  (target_dim == 1).

    z_ref : (TB, D_in)  f32  VMEM
    w1_ref: (D_in, Hp)  f32  VMEM   Hp = hidden padded to a multiple of 128
    b1_ref: (1, Hp)     f32  VMEM
    w2_ref: (Hp, 1)     f32  VMEM   second-layer weight as a column
    b2_ref: (1, 1)      f32  SMEM   scalar bias
    o_ref : (TB, 1)     f32  VMEM
    """
    z = z_ref[...]

    # Layer 1 on the MXU with f32 accumulation; bias + ReLU on the VPU.
    h = jnp.dot(z, w1_ref[...], preferred_element_type=jnp.float32) + b1_ref[...]
    h = jnp.maximum(h, 0.0)

    # Layer 2 (Hp -> 1) also on the MXU (idle otherwise); no XLU reduce, no
    # sublane->lane relayout.  Padded lanes of h are exact zeros.
    s = jnp.dot(h, w2_ref[...], preferred_element_type=jnp.float32)   # (TB, 1)

    o_ref[...] = (s + b2_ref[0, 0]).astype(o_ref.dtype)


@functools.partial(jax.jit, static_argnames=("block_batch",))
def decoder_forward(z, w1, b1, w2, b2, *, block_batch=4096):
    """z: (B, D_in); w1: (D_in, H); b1: (1, H) or (H,); w2: (H, 1); b2: (1,1)/(1,)."""
    B, d_in = z.shape
    H, t_dim = w2.shape
    assert w1.shape == (d_in, H)
    assert t_dim == 1, "kernel is specialized for target_dim == 1"

    # --- pad hidden dim to a multiple of 128 lanes (zeros preserve the math) ---
    Hp = _round_up(H, LANE)
    b1 = b1.reshape(1, H)
    if Hp != H:
        w1 = jnp.pad(w1, ((0, 0), (0, Hp - H)))
        b1 = jnp.pad(b1, ((0, 0), (0, Hp - H)))
        w2 = jnp.pad(w2, ((0, Hp - H), (0, 0)))
    b2 = b2.reshape(1, 1)

    # --- batch tiling: only z / out stream; weights stay VMEM-resident ------
    # Target at least 2 grid steps (v7x: two TensorCores split the "parallel"
    # batch axis) without dropping below the 8-row sublane granule, capped at
    # block_batch.  No jnp.pad: the partial last block is clipped by Pallas.
    TB = max(SUBLANE, min(block_batch, _round_up(-(-B // 2), SUBLANE)))
    grid = (pl.cdiv(B, TB),)

    return pl.pallas_call(
        _decoder_kernel,
        out_shape=jax.ShapeDtypeStruct((B, 1), jnp.float32),
        grid=grid,
        in_specs=[
            pl.BlockSpec((TB, d_in), lambda i: (i, 0)),   # z: streamed per tile
            pl.BlockSpec((d_in, Hp), lambda i: (0, 0)),   # w1: VMEM-resident
            pl.BlockSpec((1, Hp), lambda i: (0, 0)),      # b1: VMEM-resident
            pl.BlockSpec((Hp, 1), lambda i: (0, 0)),      # w2 col: VMEM-resident
            pl.BlockSpec(memory_space=pltpu.MemorySpace.SMEM),  # b2 scalar
        ],
        out_specs=pl.BlockSpec((TB, 1), lambda i: (i, 0)),
        compiler_params=pltpu.CompilerParams(
            dimension_semantics=("parallel",),            # v7x: 2 TCs split batch
            vmem_limit_bytes=32 * 1024 * 1024,            # TB=4096 needs ~14 MiB
        ),
    )(z, w1, b1, w2, b2)


def init_decoder_params(key, representation_dim=8, hidden=100, target_dim=1):
    """Deterministic init mimicking torch.nn.Linear defaults
    (uniform(-1/sqrt(fan_in), 1/sqrt(fan_in)) for weights and biases).
    Weights stored as (in_features, out_features) so forward is z @ W + b."""
    k1, k2, k3, k4 = jax.random.split(key, 4)
    bound1 = 1.0 / math.sqrt(representation_dim)
    bound2 = 1.0 / math.sqrt(hidden)
    w1 = jax.random.uniform(k1, (representation_dim, hidden), jnp.float32,
                            -bound1, bound1)
    b1 = jax.random.uniform(k2, (1, hidden), jnp.float32, -bound1, bound1)
    w2 = jax.random.uniform(k3, (hidden, target_dim), jnp.float32,
                            -bound2, bound2)
    b2 = jax.random.uniform(k4, (1, target_dim), jnp.float32, -bound2, bound2)
    return w1, b1, w2, b2


if __name__ == "__main__":
    key = jax.random.PRNGKey(0)
    k_params, k_z1, k_z2 = jax.random.split(key, 3)

    representation_dim = 8
    hidden = 100
    target_dim = 1

    w1, b1, w2, b2 = init_decoder_params(
        k_params, representation_dim=representation_dim,
        hidden=hidden, target_dim=target_dim)

    def ref_fn(z):
        return jnp.maximum(z @ w1 + b1, 0.0) @ w2 + b2

    # Small, sublane-aligned batch.
    z_small = jax.random.normal(k_z1, (8, representation_dim), jnp.float32)
    out_small = jax.block_until_ready(decoder_forward(z_small, w1, b1, w2, b2))
    assert out_small.shape == (8, target_dim)
    assert jnp.allclose(out_small, ref_fn(z_small), atol=1e-4, rtol=1e-4), \
        float(jnp.max(jnp.abs(out_small - ref_fn(z_small))))

    # Ragged batch: exercises the multi-step grid + partial last block
    # (no wrapper-side padding of z).
    z_ragged = jax.random.normal(k_z2, (300, representation_dim), jnp.float32)
    out_ragged = jax.block_until_ready(decoder_forward(z_ragged, w1, b1, w2, b2))
    assert out_ragged.shape == (300, target_dim)
    assert jnp.allclose(out_ragged, ref_fn(z_ragged), atol=1e-4, rtol=1e-4), \
        float(jnp.max(jnp.abs(out_ragged - ref_fn(z_ragged))))

    print("KERNEL_OK")
</pallas_src>

<mosaic_0001>
module attributes {stable_mosaic.version = 11 : i64} {
  func.func @_decoder_kernel(%arg0: i32, %arg1: memref<8x8xf32, #tpu.memory_space<vmem>>, %arg2: memref<8x128xf32, #tpu.memory_space<vmem>>, %arg3: memref<1x128xf32, #tpu.memory_space<vmem>>, %arg4: memref<128x1xf32, #tpu.memory_space<vmem>>, %arg5: memref<1x1xf32, #tpu.memory_space<smem>>, %arg6: memref<8x1xf32, #tpu.memory_space<vmem>>) attributes {dimension_semantics = [#tpu.dimension_semantics<parallel>], iteration_bounds = array<i64: 1>, scalar_prefetch = 0 : i64, scratch_operands = 0 : i64, tpu.core_type = #tpu.core_type<tc>, window_params = [{transform_indices = @transform_0, window_bounds = array<i64: 8, 8>}, {pipeline_mode = #tpu.pipeline_mode<synchronous>, transform_indices = @transform_1, window_bounds = array<i64: 8, 128>}, {pipeline_mode = #tpu.pipeline_mode<synchronous>, transform_indices = @transform_2, window_bounds = array<i64: 1, 128>}, {pipeline_mode = #tpu.pipeline_mode<synchronous>, transform_indices = @transform_3, window_bounds = array<i64: 128, 1>}, {transform_indices = @transform_4, window_bounds = array<i64: 1, 1>}, {transform_indices = @transform_5, window_bounds = array<i64: 8, 1>}]} {
    %c0 = arith.constant 0 : index
    %c0_0 = arith.constant 0 : index
    %0 = vector.load %arg1[%c0, %c0_0] : memref<8x8xf32, #tpu.memory_space<vmem>>, vector<8x8xf32>
    %c0_1 = arith.constant 0 : index
    %c0_2 = arith.constant 0 : index
    %1 = vector.load %arg2[%c0_1, %c0_2] : memref<8x128xf32, #tpu.memory_space<vmem>>, vector<8x128xf32>
    %cst = arith.constant dense<0.000000e+00> : vector<8x128xf32>
    %2 = tpu.matmul %0, %1, %cst {dimension_numbers = #tpu.dot_dimension_numbers<[1], [0], [0], [1], [0, 0, 1, 1], [], []>} : vector<8x8xf32>, vector<8x128xf32>, vector<8x128xf32> -> vector<8x128xf32>
    %c0_3 = arith.constant 0 : index
    %c0_4 = arith.constant 0 : index
    %3 = vector.load %arg3[%c0_3, %c0_4] : memref<1x128xf32, #tpu.memory_space<vmem>>, vector<1x128xf32>
    %4 = vector.broadcast %3 : vector<1x128xf32> to vector<8x128xf32>
    %5 = arith.addf %2, %4 : vector<8x128xf32>
    %cst_5 = arith.constant 0.000000e+00 : f32
    %6 = vector.broadcast %cst_5 : f32 to vector<8x128xf32>
    %7 = arith.maximumf %5, %6 : vector<8x128xf32>
    %c0_6 = arith.constant 0 : index
    %c0_7 = arith.constant 0 : index
    %8 = vector.load %arg4[%c0_6, %c0_7] : memref<128x1xf32, #tpu.memory_space<vmem>>, vector<128x1xf32>
    %cst_8 = arith.constant dense<0.000000e+00> : vector<8x1xf32>
    %9 = tpu.matmul %7, %8, %cst_8 {dimension_numbers = #tpu.dot_dimension_numbers<[1], [0], [0], [1], [0, 0, 1, 1], [], []>} : vector<8x128xf32>, vector<128x1xf32>, vector<8x1xf32> -> vector<8x1xf32>
    %c0_9 = arith.constant 0 : index
    %c0_10 = arith.constant 0 : index
    %10 = memref.load %arg5[%c0_9, %c0_10] : memref<1x1xf32, #tpu.memory_space<smem>>
    %11 = vector.broadcast %10 : f32 to vector<8x1xf32>
    %12 = arith.addf %9, %11 : vector<8x1xf32>
    %c0_11 = arith.constant 0 : index
    %c0_12 = arith.constant 0 : index
    %13 = vector.load %arg6[%c0_11, %c0_12] : memref<8x1xf32, #tpu.memory_space<vmem>>, vector<8x1xf32>
    tpu.vector_store %arg6[%c0_11, %c0_12], %12 {strides = array<i32>} : memref<8x1xf32, #tpu.memory_space<vmem>>, vector<8x1xf32>,
    return
  }
  func.func @transform_0(%arg0: i32) -> (i32, i32) {
    %c0_i32 = arith.constant 0 : i32
    %c0_i32_0 = arith.constant 0 : i32
    return %arg0, %c0_i32 : i32, i32
  }
  func.func @transform_1(%arg0: i32) -> (i32, i32) {
    %c0_i32 = arith.constant 0 : i32
    %c0_i32_0 = arith.constant 0 : i32
    %c0_i32_1 = arith.constant 0 : i32
    return %c0_i32, %c0_i32_0 : i32, i32
  }
  func.func @transform_2(%arg0: i32) -> (i32, i32) {
    %c0_i32 = arith.constant 0 : i32
    %c0_i32_0 = arith.constant 0 : i32
    %c0_i32_1 = arith.constant 0 : i32
    return %c0_i32, %c0_i32_0 : i32, i32
  }
  func.func @transform_3(%arg0: i32) -> (i32, i32) {
    %c0_i32 = arith.constant 0 : i32
    %c0_i32_0 = arith.constant 0 : i32
    %c0_i32_1 = arith.constant 0 : i32
    return %c0_i32, %c0_i32_0 : i32, i32
  }
  func.func @transform_4(%arg0: i32) -> (i32, i32) {
    %c0_i32 = arith.constant 0 : i32
    %c0_i32_0 = arith.constant 0 : i32
    %c0_i32_1 = arith.constant 0 : i32
    return %c0_i32, %c0_i32_0 : i32, i32
  }
  func.func @transform_5(%arg0: i32) -> (i32, i32) {
    %c0_i32 = arith.constant 0 : i32
    %c0_i32_0 = arith.constant 0 : i32
    return %arg0, %c0_i32 : i32, i32
  }
}

</mosaic_0001>

<bundles_post_ra>
// kernel: decoder_forward.1
= control target key start
LH: loop header
LB: loop body
LE: loop exit
PB: predicated region body
PF: predicated region fallthrough
CT: control target
= control target key end

     0   :  { %vm27_vm0 = vcmask 64512   ;;  %vm90_vm1 = vcmask 7168   ;;  %s191_s1 = inlined_call_operand.vmem [shape: f32[8,128], index: 1, kind: input, shape index: {}]   ;;  %s192_s0 = inlined_call_operand.vmem [shape: f32[8,8], index: 0, kind: input, shape index: {}]   ;;  %s193_s3 = inlined_call_operand.vmem [shape: f32[128,1], index: 3, kind: input, shape index: {}]   ;;  %s194_s2 = inlined_call_operand.vmem [shape: f32[1,128], index: 2, kind: input, shape index: {}]   ;;  %s195_s4 = inlined_call_operand.<no memory space> [shape: f32[1,1], index: 4, kind: input, shape index: {}]   ;;  %s196_s5 = inlined_call_operand.vmem [shape: f32[8,1], index: 5, kind: output, shape index: {}]  }
   0x1   :  { %v22_v0 = vld [vmem:[%s191_s1] sm:$0xff]  ;;  %v67_v2 = vld [vmem:[%s193_s3 + $0x78] sm:$0xff]  ;;  %v66_v3 = vld [vmem:[%s193_s3 + $0x70] sm:$0xff]  ;;  %v69_v22 = vstv %s195_s4 }
   0x2   :  { %v21_v1 = vld [vmem:[%s192_s0] sm:$0xff]  ;;  %46 = vmatpush.msra.mxu0 %v22_v0  ;;  %70 = vmatpush.msra.mxu1 %v67_v2  ;;  %v65_v4 = vld [vmem:[%s193_s3 + $0x68] sm:$0xff]  ;;  %v63_v6 = vld [vmem:[%s193_s3 + $0x58] sm:$0xff] }
   0x3   :  { %96 = vmatmul.msk.f32.vlgmr.msra.gmra.mxu0 %vm27_vm0, %v21_v1  ;;  %v64_v5 = vld [vmem:[%s193_s3 + $0x60] sm:$0xff]  ;;  %v62_v7 = vld [vmem:[%s193_s3 + $0x50] sm:$0xff]  ;;  %v61_v8 = vld [vmem:[%s193_s3 + $0x48] sm:$0xff] }
   0x4   :  { %71 = vmatpush.msra.mxu1 %v66_v3  ;;  %v60_v9 = vld [vmem:[%s193_s3 + $0x40] sm:$0xff]  ;;  %v59_v10 = vld [vmem:[%s193_s3 + $0x38] sm:$0xff]  ;;  %v58_v11 = vld [vmem:[%s193_s3 + $0x30] sm:$0xff] }
   0x5   :  { %v57_v12 = vld [vmem:[%s193_s3 + $0x28] sm:$0xff]  ;;  %v56_v13 = vld [vmem:[%s193_s3 + $0x20] sm:$0xff]  ;;  %v55_v14 = vld [vmem:[%s193_s3 + $0x18] sm:$0xff] }
   0x6   :  { %72 = vmatpush.msra.mxu1 %v65_v4  ;;  %v54_v15 = vld [vmem:[%s193_s3 + $0x10] sm:$0xff]  ;;  %v53_v16 = vld [vmem:[%s193_s3 + $0x8] sm:$0xff]  ;;  %v52_v17 = vld [vmem:[%s193_s3] sm:$0xff] }
   0x7   :  { %v97_v18 = vld [vmem:[%s194_s2] ss:$0 sm:$0xff] }
   0x8   :  { %73 = vmatpush.msra.mxu1 %v64_v5 }
   0xa   :  { %74 = vmatpush.msra.mxu1 %v63_v6 }
   0xc   :  { %75 = vmatpush.msra.mxu1 %v62_v7 }
   0xe   :  { %76 = vmatpush.msra.mxu1 %v61_v8 }
  0x10   :  { %77 = vmatpush.msra.mxu1 %v60_v9 }
  0x12   :  { %78 = vmatpush.msra.mxu1 %v59_v10 }
  0x14   :  { %79 = vmatpush.msra.mxu1 %v58_v11 }
  0x16   :  { %80 = vmatpush.msra.mxu1 %v57_v12 }
  0x18   :  { %81 = vmatpush.msra.mxu1 %v56_v13 }
  0x1a   :  { %82 = vmatpush.msra.mxu1 %v55_v14 }
  0x1c   :  { %83 = vmatpush.msra.mxu1 %v54_v15 }
  0x1e   :  { %84 = vmatpush.msra.mxu1 %v53_v16 }
  0x20   :  { %85 = vmatpush.msra.mxu1 %v52_v17 }
  0x80   :  { %v48_v19 = vpop.f32.mrf.mxu0 }
  0x81   :  { %v49_v20 = vadd.f32 %v97_v18, %v48_v19 }
  0x83   :  { %v51_v21 = vmax.f32 %v49_v20, 0.0 }
  0x85   :  { %86 = vmatmul.f32.vlgmr.msra.gmra.mxu1 %v51_v21 }
 0x102   :  { %v87_v23 = vpop.f32.mrf.mxu1 }
 0x103   :  { %v88_v24 = vadd.f32 %v87_v23, %v69_v22 }
 0x105   :  { %91 = vst.msk [vmem:[%s196_s5] sm:$0xff] %vm90_vm1, %v88_v24 }

</bundles_post_ra>
